<compile_context>
chip_gen: v7x
topology: tpu7x:2x2x1
jax: 0.10.0
libtpu: 0.0.40
codegen_flags: <defaults>
</compile_context>

<pallas_src>
import functools

import jax
import jax.numpy as jnp
from jax import lax
from jax.experimental import pallas as pl
from jax.experimental.pallas import tpu as pltpu


def _round_up(x, m):
    return ((x + m - 1) // m) * m


# ---------------------------------------------------------------------------
# Pass 1: per-(batch, channel) sum and sum-of-squares over all (padded) tokens.
# ---------------------------------------------------------------------------
def _gn_stats_kernel(x_ref, sum_ref, sq_ref):
    @pl.when(pl.program_id(1) == 0)
    def _():
        sum_ref[...] = jnp.zeros(sum_ref.shape, jnp.float32)
        sq_ref[...] = jnp.zeros(sq_ref.shape, jnp.float32)

    x = x_ref[0].astype(jnp.float32)                     # (ts, C)
    sum_ref[0] += jnp.sum(x, axis=0, keepdims=True)      # (1, C)
    sq_ref[0] += jnp.sum(x * x, axis=0, keepdims=True)   # (1, C)


# ---------------------------------------------------------------------------
# Pass 2: fused GroupNorm-apply + QKV projection (single (C, 3C) matmul).
# 1/sqrt(C) is already folded into the Q columns of Wqkv / bqkv host-side.
# ---------------------------------------------------------------------------
def _gn_qkv_kernel(x_ref, scale_ref, shift_ref, wqkv_ref, bqkv_ref,
                   q_ref, k_ref, v_ref):
    c = q_ref.shape[-1]
    xn = x_ref[0].astype(jnp.float32) * scale_ref[0] + shift_ref[0]       # (tp, C)
    qkv = jnp.dot(xn.astype(wqkv_ref.dtype), wqkv_ref[...],
                  preferred_element_type=jnp.float32) + bqkv_ref[...]     # (tp, 3C)
    q_ref[0] = qkv[:, :c].astype(q_ref.dtype)
    k_ref[0] = qkv[:, c:2 * c].astype(k_ref.dtype)
    v_ref[0] = qkv[:, 2 * c:].astype(v_ref.dtype)


# ---------------------------------------------------------------------------
# Pass 3: flash attention (online softmax) + proj_out + residual.
# ---------------------------------------------------------------------------
def _flash_kernel(xq_ref, q_ref, k_ref, v_ref, wp_ref, bp_ref, o_ref,
                  acc_scr, m_scr, l_scr, *, fast, kv_resident, tk, seq_len,
                  masked):
    ki = pl.program_id(2)

    @pl.when(ki == 0)
    def _():
        m_scr[...] = jnp.full(m_scr.shape, -jnp.inf, jnp.float32)
        l_scr[...] = jnp.zeros(l_scr.shape, jnp.float32)
        acc_scr[...] = jnp.zeros(acc_scr.shape, jnp.float32)

    if kv_resident:
        start = pl.multiple_of(ki * tk, tk)
        k = k_ref[0, pl.ds(start, tk), :]                 # (tk, C)
        v = v_ref[0, pl.ds(start, tk), :]
    else:
        k = k_ref[0]                                      # (tk, C)
        v = v_ref[0]

    # scores: contract the channel dim of q and k (no explicit transpose)
    s = lax.dot_general(q_ref[0], k, (((1,), (1,)), ((), ())),
                        preferred_element_type=jnp.float32)       # (tq, tk)
    if masked:
        col = ki * tk + lax.broadcasted_iota(jnp.int32, s.shape, 1)
        s = jnp.where(col < seq_len, s, -1e30)

    # online softmax update (all f32)
    m_prev = m_scr[...]                                   # (tq, 1)
    m_new = jnp.maximum(m_prev, jnp.max(s, axis=-1, keepdims=True))
    alpha = jnp.exp(m_prev - m_new)
    p = jnp.exp(s - m_new)                                # (tq, tk)
    l_scr[...] = alpha * l_scr[...] + jnp.sum(p, axis=-1, keepdims=True)
    acc_scr[...] = alpha * acc_scr[...] + jnp.dot(
        p.astype(v.dtype), v, preferred_element_type=jnp.float32)
    m_scr[...] = m_new

    # last kv step: normalize, project out, add residual, store
    @pl.when(ki == pl.num_programs(2) - 1)
    def _():
        inv_l = pl.reciprocal(l_scr[...], approx=fast)
        attn_out = acc_scr[...] * inv_l                   # (tq, C)
        out = jnp.dot(attn_out.astype(wp_ref.dtype), wp_ref[...],
                      preferred_element_type=jnp.float32) + bp_ref[...]
        o_ref[0] = (xq_ref[0].astype(jnp.float32) + out).astype(o_ref.dtype)


# ---------------------------------------------------------------------------
# Wrapper
# ---------------------------------------------------------------------------
def attn_block_3d(x, gamma, beta, wqkv_t, bqkv, wproj_t, bproj, *,
                  num_groups, block_q=256, block_k=512, fast=True, eps=1e-6,
                  force_kv_resident=None):
    """x: (b, c, h, w, d).  wqkv_t: (c, 3c), wproj_t: (c, c) (already W^T)."""
    b, c, h, w, d = x.shape
    n = h * w * d
    assert c % num_groups == 0, "num_groups must divide channels"
    xt = jnp.transpose(x, (0, 2, 3, 4, 1)).reshape(b, n, c)   # (b, N, c)

    # --- tiles: tq | tk, multiples of 8; pad N to a multiple of tk so every
    # kv tile holds at least one valid key (the tail is masked in-kernel).
    tq = _round_up(min(block_q, n), 8)
    tk = _round_up(max(min(block_k, n), tq), tq)
    np_ = _round_up(n, tk)
    masked = np_ != n
    if masked:
        xt = jnp.pad(xt, ((0, 0), (0, np_ - n), (0, 0)))
    ts = tk * max(1, min(np_ // tk, max(1, 2048 // tk)))   # GN-stats tile
    tp = tk                                                # QKV-projection tile

    cdt = jnp.bfloat16 if fast else jnp.float32
    cb = jnp.dtype(cdt).itemsize
    xb = jnp.dtype(x.dtype).itemsize

    # --- generation-aware VMEM budget (v7x: 64 MiB phys -> ~38 MiB budget;
    # v5e/v6e: 128 MiB -> ~96 MiB) ------------------------------------------
    try:
        cap = int(pltpu.get_tpu_info().vmem_capacity_bytes)
    except Exception:
        cap = 64 * 2 ** 20
    budget = max(min(int(0.75 * cap), cap - 26 * 2 ** 20), 16 * 2 ** 20)

    def _flash_vmem(resident):
        kv = (np_ if resident else tk) * c * cb
        return (2 * tq * c * xb              # residual x tile (double-buffered)
                + 2 * tq * c * cb            # Q tile
                + 2 * 2 * kv                 # K, V (double-buffered)
                + 2 * (c * c * cb + c * 4)   # Wproj + bias
                + 2 * tq * c * xb            # out tile
                + tq * c * 4 + 2 * tq * 4)   # scratch acc / m / l

    if force_kv_resident is None:
        kv_resident = _flash_vmem(True) <= budget
    else:
        kv_resident = bool(force_kv_resident)

    def _limit(est):
        return int(min(max(int(est * 1.3), 16 * 2 ** 20), budget))

    # ---- pass 1: GroupNorm statistics (channel sums) ------------------------
    sums, sqs = pl.pallas_call(
        _gn_stats_kernel,
        out_shape=(jax.ShapeDtypeStruct((b, 1, c), jnp.float32),
                   jax.ShapeDtypeStruct((b, 1, c), jnp.float32)),
        grid=(b, np_ // ts),
        in_specs=[pl.BlockSpec((1, ts, c), lambda i, j: (i, j, 0))],
        out_specs=(pl.BlockSpec((1, 1, c), lambda i, j: (i, 0, 0)),
                   pl.BlockSpec((1, 1, c), lambda i, j: (i, 0, 0))),
        compiler_params=pltpu.CompilerParams(
            dimension_semantics=("parallel", "arbitrary"),
            vmem_limit_bytes=_limit(2 * ts * c * xb + 8 * c * 4)),
    )(xt)

    # Tiny per-group reduction + gamma/beta fold (plain JAX, (b, C) work).
    # TODO(synk): E[x^2]-E[x]^2 can cancel for large-mean inputs; a centered
    # second pass would be safer if this block sits very early in a network.
    cg = c // num_groups
    cnt = float(n * cg)
    gsum = sums.reshape(b, num_groups, cg).sum(axis=-1)
    gsq = sqs.reshape(b, num_groups, cg).sum(axis=-1)
    mu = gsum / cnt
    var = gsq / cnt - mu * mu
    rstd = lax.rsqrt(var + eps)
    mu_c = jnp.repeat(mu, cg, axis=1)                       # (b, C)
    rstd_c = jnp.repeat(rstd, cg, axis=1)                   # (b, C)
    g32 = gamma[None, :].astype(jnp.float32)
    scale = (rstd_c * g32).reshape(b, 1, c).astype(jnp.float32)
    shift = (beta[None, :].astype(jnp.float32)
             - mu_c * rstd_c * g32).reshape(b, 1, c).astype(jnp.float32)

    # ---- fold 1/sqrt(C) into Q columns of the fused QKV weight --------------
    att_scale = float(c) ** -0.5
    wqkv_f = wqkv_t.astype(jnp.float32)
    wqkv_s = jnp.concatenate([wqkv_f[:, :c] * att_scale, wqkv_f[:, c:]],
                             axis=1).astype(cdt)            # (C, 3C)
    bqkv_f = bqkv.astype(jnp.float32)
    bqkv_s = jnp.concatenate([bqkv_f[:c] * att_scale, bqkv_f[c:]]
                             ).reshape(1, 3 * c)            # (1, 3C) f32
    wp = wproj_t.astype(cdt)
    bp = bproj.reshape(1, c).astype(jnp.float32)

    # ---- pass 2: GN-apply + QKV projection (each token projected ONCE) -----
    pre_est = (2 * tp * c * xb + 4 * c * 4
               + 2 * (c * 3 * c * cb + 3 * c * 4)
               + 2 * 3 * tp * c * cb)
    q_all, k_all, v_all = pl.pallas_call(
        _gn_qkv_kernel,
        out_shape=(jax.ShapeDtypeStruct((b, np_, c), cdt),
                   jax.ShapeDtypeStruct((b, np_, c), cdt),
                   jax.ShapeDtypeStruct((b, np_, c), cdt)),
        grid=(b, np_ // tp),
        in_specs=[
            pl.BlockSpec((1, tp, c), lambda i, j: (i, j, 0)),   # x tile
            pl.BlockSpec((1, 1, c), lambda i, j: (i, 0, 0)),    # GN scale
            pl.BlockSpec((1, 1, c), lambda i, j: (i, 0, 0)),    # GN shift
            pl.BlockSpec((c, 3 * c), lambda i, j: (0, 0)),      # Wqkv (Q scaled)
            pl.BlockSpec((1, 3 * c), lambda i, j: (0, 0)),      # bqkv (Q scaled)
        ],
        out_specs=(pl.BlockSpec((1, tp, c), lambda i, j: (i, j, 0)),
                   pl.BlockSpec((1, tp, c), lambda i, j: (i, j, 0)),
                   pl.BlockSpec((1, tp, c), lambda i, j: (i, j, 0))),
        compiler_params=pltpu.CompilerParams(
            dimension_semantics=("parallel", "parallel"),
            vmem_limit_bytes=_limit(pre_est)),
    )(xt, scale, shift, wqkv_s, bqkv_s)

    # ---- pass 3: flash attention + proj_out + residual ----------------------
    if kv_resident:
        # Constant block index across (qi, ki): K/V DMA'd once per batch and
        # kept VMEM-resident for the whole attention sweep.
        k_spec = pl.BlockSpec((1, np_, c), lambda i, qi, ki: (i, 0, 0))
        v_spec = pl.BlockSpec((1, np_, c), lambda i, qi, ki: (i, 0, 0))
    else:
        k_spec = pl.BlockSpec((1, tk, c), lambda i, qi, ki: (i, ki, 0))
        v_spec = pl.BlockSpec((1, tk, c), lambda i, qi, ki: (i, ki, 0))

    flash = functools.partial(_flash_kernel, fast=fast, kv_resident=kv_resident,
                              tk=tk, seq_len=n, masked=masked)
    out = pl.pallas_call(
        flash,
        out_shape=jax.ShapeDtypeStruct((b, np_, c), x.dtype),
        grid=(b, np_ // tq, np_ // tk),
        in_specs=[
            pl.BlockSpec((1, tq, c), lambda i, qi, ki: (i, qi, 0)),  # x (residual)
            pl.BlockSpec((1, tq, c), lambda i, qi, ki: (i, qi, 0)),  # Q tile
            k_spec,                                                  # K
            v_spec,                                                  # V
            pl.BlockSpec((c, c), lambda i, qi, ki: (0, 0)),          # Wproj
            pl.BlockSpec((1, c), lambda i, qi, ki: (0, 0)),          # bproj
        ],
        out_specs=pl.BlockSpec((1, tq, c), lambda i, qi, ki: (i, qi, 0)),
        scratch_shapes=[
            pltpu.VMEM((tq, c), jnp.float32),   # output accumulator
            pltpu.VMEM((tq, 1), jnp.float32),   # running max
            pltpu.VMEM((tq, 1), jnp.float32),   # running denominator
        ],
        compiler_params=pltpu.CompilerParams(
            dimension_semantics=("parallel", "parallel", "arbitrary"),
            vmem_limit_bytes=_limit(_flash_vmem(kv_resident))),
    )(xt, q_all, k_all, v_all, wp, bp)

    out = out[:, :n, :]
    return jnp.transpose(out.reshape(b, h, w, d, c), (0, 4, 1, 2, 3))


def attn_block_3d_ref(x, gamma, beta, wqkv_t, bqkv, wproj_t, bproj, *, num_groups):
    """Pure-JAX reference mirroring the PyTorch forward."""
    b, c, h, w, d = x.shape
    n = h * w * d
    cg = c // num_groups
    xg = x.reshape(b, num_groups, cg * h * w * d)
    mu = jnp.mean(xg, axis=-1, keepdims=True)
    var = jnp.mean((xg - mu) ** 2, axis=-1, keepdims=True)
    xn = ((xg - mu) / jnp.sqrt(var + 1e-6)).reshape(b, c, h, w, d)
    xn = xn * gamma[None, :, None, None, None] + beta[None, :, None, None, None]
    t = jnp.transpose(xn, (0, 2, 3, 4, 1)).reshape(b, n, c)
    qkv = t @ wqkv_t + bqkv
    q, k, v = qkv[..., :c], qkv[..., c:2 * c], qkv[..., 2 * c:]
    attn = jnp.einsum("bqc,bkc->bqk", q, k) * (float(c) ** -0.5)
    attn = jax.nn.softmax(attn, axis=-1)
    out = jnp.einsum("bqk,bkc->bqc", attn, v)
    out = out @ wproj_t + bproj
    out = jnp.transpose(out.reshape(b, h, w, d, c), (0, 4, 1, 2, 3))
    return x + out


if __name__ == "__main__":
    key = jax.random.PRNGKey(0)
    ks = jax.random.split(key, 14)

    def make_inputs(keys, B, C, H, W, D):
        kx, kw1, kb1, kw2, kb2, kg, kbt = keys
        x = jax.random.normal(kx, (B, C, H, W, D), dtype=jnp.float32)
        gamma = 1.0 + 0.1 * jax.random.normal(kg, (C,), dtype=jnp.float32)
        beta = 0.1 * jax.random.normal(kbt, (C,), dtype=jnp.float32)
        wqkv_t = 0.1 * jax.random.normal(kw1, (C, 3 * C), dtype=jnp.float32)
        bqkv = 0.1 * jax.random.normal(kb1, (3 * C,), dtype=jnp.float32)
        wproj_t = 0.1 * jax.random.normal(kw2, (C, C), dtype=jnp.float32)
        bproj = 0.1 * jax.random.normal(kb2, (C,), dtype=jnp.float32)
        return x, gamma, beta, wqkv_t, bqkv, wproj_t, bproj

    # Case 1: batch=2, channels=64, 4x4x4 spatial -> N=64 tokens, 32 groups.
    args1 = make_inputs(ks[:7], 2, 64, 4, 4, 4)
    ng1 = 32   # matches normalize(in_channels) for C=64
    ref1 = attn_block_3d_ref(*args1, num_groups=ng1)

    # exact path (f32 matmuls, exact reciprocal), multi-tile flash grid,
    # auto VMEM-resident K/V -- tight tolerance
    out = attn_block_3d(*args1, num_groups=ng1, block_q=16, block_k=32,
                        fast=False)
    out = jax.block_until_ready(out)
    assert out.shape == args1[0].shape
    err = float(jnp.max(jnp.abs(out - ref1)))
    assert jnp.allclose(out, ref1, atol=1e-4, rtol=1e-4), err

    # fast path (bf16 MXU operands, approx reciprocal), forced K/V streaming
    # (exercises the non-resident branch) -- relaxed tolerance
    out = attn_block_3d(*args1, num_groups=ng1, block_q=16, block_k=32,
                        fast=True, force_kv_resident=False)
    out = jax.block_until_ready(out)
    err = float(jnp.max(jnp.abs(out - ref1)))
    assert jnp.allclose(out, ref1, atol=5e-2, rtol=5e-2), err

    # Case 2: N = 3*3*5 = 45 -> padded to 48, exercises the masked-tail path.
    args2 = make_inputs(ks[7:14], 2, 64, 3, 3, 5)
    ng2 = 32
    ref2 = attn_block_3d_ref(*args2, num_groups=ng2)
    out2 = attn_block_3d(*args2, num_groups=ng2, block_q=16, block_k=16,
                         fast=False)
    out2 = jax.block_until_ready(out2)
    err2 = float(jnp.max(jnp.abs(out2 - ref2)))
    assert jnp.allclose(out2, ref2, atol=1e-4, rtol=1e-4), err2

    print("KERNEL_OK")
</pallas_src>

<mosaic_0001>
module attributes {stable_mosaic.version = 11 : i64} {
  func.func @_gn_stats_kernel(%arg0: i32, %arg1: i32, %arg2: memref<1x64x64xf32, #tpu.memory_space<vmem>>, %arg3: memref<1x1x64xf32, #tpu.memory_space<vmem>>, %arg4: memref<1x1x64xf32, #tpu.memory_space<vmem>>) attributes {dimension_semantics = [#tpu.dimension_semantics<parallel>, #tpu.dimension_semantics<arbitrary>], iteration_bounds = array<i64: 2, 1>, scalar_prefetch = 0 : i64, scratch_operands = 0 : i64, tpu.core_type = #tpu.core_type<tc>, window_params = [{transform_indices = @transform_0, window_bounds = array<i64: 1, 64, 64>}, {transform_indices = @transform_1, window_bounds = array<i64: 1, 1, 64>}, {transform_indices = @transform_2, window_bounds = array<i64: 1, 1, 64>}]} {
    %c0_i32 = arith.constant 0 : i32
    %0 = arith.cmpi eq, %arg1, %c0_i32 : i32
    %1 = arith.extui %0 : i1 to i32
    %c0_i32_0 = arith.constant 0 : i32
    %2 = arith.cmpi ne, %1, %c0_i32_0 : i32
    scf.if %2 {
      %cst_16 = arith.constant 0.000000e+00 : f32
      %22 = vector.broadcast %cst_16 : f32 to vector<1x1x64xf32>
      %c0_17 = arith.constant 0 : index
      %c0_18 = arith.constant 0 : index
      %c0_19 = arith.constant 0 : index
      %23 = vector.load %arg3[%c0_17, %c0_18, %c0_19] : memref<1x1x64xf32, #tpu.memory_space<vmem>>, vector<1x1x64xf32>
      tpu.vector_store %arg3[%c0_17, %c0_18, %c0_19], %22 {strides = array<i32>} : memref<1x1x64xf32, #tpu.memory_space<vmem>>, vector<1x1x64xf32>,
      %cst_20 = arith.constant 0.000000e+00 : f32
      %24 = vector.broadcast %cst_20 : f32 to vector<1x1x64xf32>
      %c0_21 = arith.constant 0 : index
      %c0_22 = arith.constant 0 : index
      %c0_23 = arith.constant 0 : index
      %25 = vector.load %arg4[%c0_21, %c0_22, %c0_23] : memref<1x1x64xf32, #tpu.memory_space<vmem>>, vector<1x1x64xf32>
      tpu.vector_store %arg4[%c0_21, %c0_22, %c0_23], %24 {strides = array<i32>} : memref<1x1x64xf32, #tpu.memory_space<vmem>>, vector<1x1x64xf32>,
    } else {
    }
    %c0 = arith.constant 0 : index
    %c0_1 = arith.constant 0 : index
    %c0_2 = arith.constant 0 : index
    %3 = vector.load %arg2[%c0, %c0_1, %c0_2] : memref<1x64x64xf32, #tpu.memory_space<vmem>>, vector<1x64x64xf32>
    %4 = vector.shape_cast %3 : vector<1x64x64xf32> to vector<64x64xf32>
    %c0_3 = arith.constant 0 : index
    %c0_4 = arith.constant 0 : index
    %c0_5 = arith.constant 0 : index
    %5 = vector.load %arg3[%c0_3, %c0_4, %c0_5] : memref<1x1x64xf32, #tpu.memory_space<vmem>>, vector<1x1x64xf32>
    %6 = vector.shape_cast %5 : vector<1x1x64xf32> to vector<1x64xf32>
    %cst = arith.constant dense<0.000000e+00> : vector<64xf32>
    %7 = vector.multi_reduction <add>, %4, %cst [0] : vector<64x64xf32> to vector<64xf32>
    %8 = vector.shape_cast %7 : vector<64xf32> to vector<1x64xf32>
    %9 = arith.addf %6, %8 : vector<1x64xf32>
    %c0_6 = arith.constant 0 : index
    %c0_7 = arith.constant 0 : index
    %c0_8 = arith.constant 0 : index
    %10 = vector.load %arg3[%c0_6, %c0_7, %c0_8] : memref<1x1x64xf32, #tpu.memory_space<vmem>>, vector<1x1x64xf32>
    %11 = vector.shape_cast %10 : vector<1x1x64xf32> to vector<1x64xf32>
    %12 = vector.shape_cast %9 : vector<1x64xf32> to vector<1x1x64xf32>
    tpu.vector_store %arg3[%c0_6, %c0_7, %c0_8], %12 {strides = array<i32>} : memref<1x1x64xf32, #tpu.memory_space<vmem>>, vector<1x1x64xf32>,
    %c0_9 = arith.constant 0 : index
    %c0_10 = arith.constant 0 : index
    %c0_11 = arith.constant 0 : index
    %13 = vector.load %arg4[%c0_9, %c0_10, %c0_11] : memref<1x1x64xf32, #tpu.memory_space<vmem>>, vector<1x1x64xf32>
    %14 = vector.shape_cast %13 : vector<1x1x64xf32> to vector<1x64xf32>
    %15 = arith.mulf %4, %4 : vector<64x64xf32>
    %cst_12 = arith.constant dense<0.000000e+00> : vector<64xf32>
    %16 = vector.multi_reduction <add>, %15, %cst_12 [0] : vector<64x64xf32> to vector<64xf32>
    %17 = vector.shape_cast %16 : vector<64xf32> to vector<1x64xf32>
    %18 = arith.addf %14, %17 : vector<1x64xf32>
    %c0_13 = arith.constant 0 : index
    %c0_14 = arith.constant 0 : index
    %c0_15 = arith.constant 0 : index
    %19 = vector.load %arg4[%c0_13, %c0_14, %c0_15] : memref<1x1x64xf32, #tpu.memory_space<vmem>>, vector<1x1x64xf32>
    %20 = vector.shape_cast %19 : vector<1x1x64xf32> to vector<1x64xf32>
    %21 = vector.shape_cast %18 : vector<1x64xf32> to vector<1x1x64xf32>
    tpu.vector_store %arg4[%c0_13, %c0_14, %c0_15], %21 {strides = array<i32>} : memref<1x1x64xf32, #tpu.memory_space<vmem>>, vector<1x1x64xf32>,
    return
  }
  func.func @transform_0(%arg0: i32, %arg1: i32) -> (i32, i32, i32) {
    %c0_i32 = arith.constant 0 : i32
    %c0_i32_0 = arith.constant 0 : i32
    return %arg0, %arg1, %c0_i32 : i32, i32, i32
  }
  func.func @transform_1(%arg0: i32, %arg1: i32) -> (i32, i32, i32) {
    %c0_i32 = arith.constant 0 : i32
    %c0_i32_0 = arith.constant 0 : i32
    %c0_i32_1 = arith.constant 0 : i32
    return %arg0, %c0_i32, %c0_i32_0 : i32, i32, i32
  }
  func.func @transform_2(%arg0: i32, %arg1: i32) -> (i32, i32, i32) {
    %c0_i32 = arith.constant 0 : i32
    %c0_i32_0 = arith.constant 0 : i32
    %c0_i32_1 = arith.constant 0 : i32
    return %arg0, %c0_i32, %c0_i32_0 : i32, i32, i32
  }
}

</mosaic_0001>

<bundles_post_ra>
// kernel: tpu_custom_call.1
= control target key start
LH: loop header
LB: loop body
LE: loop exit
PB: predicated region body
PF: predicated region fallthrough
CT: control target
= control target key end

     0   :  { %8 = vsyncpa [#allocation3], 0  ;;  %s899_s0 = inlined_call_operand.hbm [shape: f32[2,64,64], index: 0, kind: input, shape index: {}]   ;;  %s900_s1 = inlined_call_operand.hbm [shape: f32[2,1,64], index: 1, kind: output, shape index: {0}]   ;;  %s901_s2 = inlined_call_operand.hbm [shape: f32[2,1,64], index: 2, kind: output, shape index: {1}]  }
   0x1   :  { %10 = vsyncpa [#allocation3 + $0x1], 0 }
   0x2   :  { %11 = vsyncpa [#allocation4], 0 }
   0x3   :  { %13 = vsyncpa [#allocation4 + $0x1], 0 }
   0x4   :  { %14 = vsyncpa [#allocation7], 0 }
   0x5   :  { %16 = vsyncpa [#allocation7 + $0x1], 0  ;;  %s647_s9 = smov 0   ;;  %s649_s10 = smov 0  }
   0x6   :  { %s651_s11 = smov 0   ;;  %s653_s12 = smov 0  }
   0x7   :  { %s655_s13 = smov 0   ;;  %s657_s14 = smov 0  }
   0x8 LB: > { %s396_s15 = sadd.s32 4294967295, %s624_s14   ;;  %s397_s16 = sadd.s32 4294967294, %s624_s14   ;;  %s624_s14 = sphi %s657_s14, %s22_s14   ;;  %s620_s13 = sphi %s655_s13, %s916_s13   ;;  %s616_s12 = sphi %s653_s12, %s915_s12   ;;  %s612_s11 = sphi %s651_s11, %s914_s11   ;;  %s608_s10 = sphi %s649_s10, %s913_s10   ;;  %s604_s9 = sphi %s647_s9, %s912_s9  }
   0x9   : > { %s34_s17 = sadd.s32 1, %s620_s13  ;;  %s43_s18 = sadd.s32 1, %s612_s11 }
   0xa   : > { %p36_p0 = scmp.ge.s32.totalorder %s34_s17, 2  ;;  %p50_p1 = scmp.ne.s32.totalorder %s612_s11, %s608_s10 }
   0xb   : > { %p51_p2 = scmp.eq.s32.totalorder %s624_s14, 0  ;;  %p56_p3 = scmp.ne.s32.totalorder %s608_s10, %s604_s9 }
   0xc   : > { %s918_s17 = smov (%p36_p0, %s34_s17), 0  ;;  %p57_p5 = scmp.eq.s32.totalorder %s396_s15, 0 }
   0xd   : > { %p688_p4 = por %p51_p2, %p50_p1  ;;  %s38_s20 = ssub.s32 %s620_s13, %s918_s17 }
   0xe   : > { %p80_p6 = scmp.eq.s32.totalorder %s396_s15, 1  ;;  %p41_p7 = scmp.eq.s32.totalorder %s38_s20, 0 }
   0xf   : > { %p694_p8 = por %p57_p5, %p56_p3  ;;  %p86_p10 = scmp.eq.s32.totalorder %s397_s16, 1 }
  0x10   : > { %p698_p9 = por %p80_p6, %p50_p1  ;;  %p427_p13 = scmp.lt.s32.totalorder %s624_s14, 2 }
  0x11   : > { %s703_s23 = scalar_select %p41_p7, %s612_s11, %s43_s18  }
  0x12   : > { %s905_s22 = scalar_select %p698_p9, 1, 0 }
  0x13   : > { %p705_p11 = por %p86_p10, %p56_p3  ;;  %s132_s25 = sand.u32 1, %s612_s11  }
  0x14   : > { %s400_s26 = sshll.u32 %s132_s25, 6  ;;  %s409_s27 = sshll.u32 %s620_s13, 10 }
  0x15   : > { %s906_s24 = scalar_select %p705_p11, 1, 0 }
  0x16   : > { %s716_s30 = scalar_lea.hbm %s899_s0, %s409_s27  ;;  %s136_s3 = scalar_lea.vmem [#allocation2], %s400_s26 }
  0x17   : > { %s145_s4 = sshll.u32 %s136_s3, 4  ;;  %p722_p0 = pnand %p427_p13, %p688_p4  ;;  %s718_s4 = int_to_ptr.vmem [resolvable:$true] %s145_s4 }
  0x18   : > { %s727_s6 = scalar_lea.sflag [#allocation3], %s132_s25  ;;  %s480_s7 = scalar_lea.hbm %s716_s30, 1024 }
  0x19   : > { %p481_p2 = scmp.ne.s32.totalorder %s716_s30, %s480_s7  ;;  %p482_p3 = pneg %p722_p0 }
  0x1a   : > { %s485_s16 = scalar_lea.hbm %s899_s0, 2048  ;;  %p486_p4 = scmp.lt.u32.totalorder %s716_s30, %s899_s0 }
  0x1b   : > { %p483_p5 = pnand %p482_p3, %p481_p2  ;;  %p487_p7 = scmp.lt.u32.totalorder %s485_s16, %s480_s7 }
  0x1c   : > { %p489_p13 = scmp.lt.u32.totalorder %s480_s7, %s716_s30 }
  0x1d   : > { %p484_p6 = pneg %p483_p5  ;;  %p488_p10 = por %p487_p7, %p486_p4 }
  0x1f   : > { %p490_p12 = por %p489_p13, %p488_p10 }
  0x21   : > { %p491_p1 = pnand %p490_p12, %p484_p6 }
  0x23   : > { %494 = shalt.err (!%p491_p1)
}
  0x24   : > { %s495_s20 = scalar_lea.vmem %s718_s4, 1024  ;;  %s626_s25 = smov [#allocation2]  }
  0x25   : > { %p496_p2 = scmp.ne.s32.totalorder %s718_s4, %s495_s20  ;;  %s500_s26 = sshll.u32 %s626_s25, 4  ;;  %s501_s26 = int_to_ptr.vmem [resolvable:$false] %s500_s26 }
  0x26   : > { %s502_s27 = scalar_lea.vmem %s501_s26, 2048  ;;  %p503_p9 = scmp.lt.s32.totalorder %s718_s4, %s501_s26 }
  0x27   : > { %p498_p5 = pnand %p496_p2, %p482_p3  ;;  %p504_p4 = scmp.lt.s32.totalorder %s502_s27, %s495_s20 }
  0x29   : > { %p499_p11 = pneg %p498_p5  ;;  %p505_p7 = por %p504_p4, %p503_p9 }
  0x2b   : > { %p506_p10 = pnand %p505_p7, %p499_p11 }
  0x2d   : > { %509 = shalt.err (!%p506_p10)
}
  0x2e   : > { %s627_s28 = smov 128   ;;  %s628_s29 = smov 8  }
  0x2f   : > { %419 = dma.hbm_to_vmem [thread:$0]  (!%p722_p0), %s716_s30, 1024, %s718_s4, %s727_s6, %s627_s28, %s627_s28, %s628_s29  }
  0x30   : > { %p153_p12 = scmp.lt.s32.totalorder %s624_s14, 3  ;;  %p908_p1 = scmp.ge.s32.totalorder %s624_s14, 1 }
  0x32   : > { %p154_p3 = pnand %p908_p1, %p153_p12 }
  0x33   : > { %s759_s3 = sand.u32 (!%p154_p3), 1, %s608_s10  }
  0x34   : > { %157 = sbr.rel (%p154_p3) target bundleno = 128 (0x80), region = 24  ;;  %s404_s7 = sshll.u32 (!%p154_p3), %s759_s3, 6 }
  0x35   : > { %s160_s8 = scalar_lea.sflag (!%p154_p3), [#allocation3], %s759_s3  ;;  %s763_s15 = scalar_lea.vmem (!%p154_p3), [#allocation2], %s404_s7 }
  0x3b   : > { %591 = dma.done.wait (%p694_p8), %s160_s8, 1024  }
  0x3c   : > { %593 = vsyncadd (%p694_p8), %s160_s8, 4294966272  ;;  %vm192_vm0 = vcmask 516096   ;;  %s770_s30 = scalar_lea.vmem [#allocation5], %s759_s3  ;;  %v629_v0 = vmov 0.0   ;;  %s775_s4 = scalar_lea.vmem [#allocation6], %s759_s3  ;;  %vm204_vm1 = vcmask 523264  }
  0x3d   : > { %193 = vst.msk [vmem:[%s770_s30] sm:$0x1] %vm192_vm0, %v629_v0  ;;  %194 = vst.msk [vmem:[%s775_s4] sm:$0x1] %vm192_vm0, %v629_v0  ;;  %v195_v1 = vld [vmem:[%s763_s15] sm:$0xff]  ;;  %v196_v2 = vld [vmem:[%s763_s15 + $0x8] sm:$0xff] }
  0x3e   : > { %v197_v3 = vld [vmem:[%s763_s15 + $0x10] sm:$0xff]  ;;  %v198_v4 = vld [vmem:[%s763_s15 + $0x18] sm:$0xff]  ;;  %v205_v5 = vsel %vm204_vm1, %v195_v1, 0.0  ;;  %v206_v6 = vsel %vm204_vm1, %v196_v2, 0.0  ;;  %v230_v8 = vmul.f32 %v195_v1, %v195_v1  ;;  %v199_v9 = vld [vmem:[%s763_s15 + $0x20] sm:$0xff]  ;;  %v231_v11 = vmul.f32 %v196_v2, %v196_v2  ;;  %s405_s21 = sshll.u32 %s616_s12, 4 }
  0x3f   : > { %v208_v7 = vsel %vm204_vm1, %v197_v3, 0.0  ;;  %v207_v10 = vadd.f32 %v206_v6, %v205_v5  ;;  %v210_v12 = vsel %vm204_vm1, %v198_v4, 0.0  ;;  %v232_v13 = vmul.f32 %v197_v3, %v197_v3  ;;  %v200_v14 = vld [vmem:[%s763_s15 + $0x28] sm:$0xff]  ;;  %v201_v21 = vld [vmem:[%s763_s15 + $0x30] sm:$0xff]  ;;  %v202_v28 = vld [vmem:[%s763_s15 + $0x38] sm:$0xff]  ;;  %s278_s5 = sshll.u32 %s770_s30, 4  ;;  %s811_s18 = scalar_lea.hbm %s900_s1, %s405_s21  ;;  %s813_s5 = int_to_ptr.vmem [resolvable:$true] %s278_s5 }
  0x40   : > { %v233_v16 = vmul.f32 %v198_v4, %v198_v4  ;;  %v212_v17 = vsel %vm204_vm1, %v199_v9, 0.0  ;;  %v234_v18 = vmul.f32 %v199_v9, %v199_v9  ;;  %v238_v19 = vsel %vm204_vm1, %v230_v8, 0.0  ;;  %s291_s19 = sshll.u32 %s775_s4, 4  ;;  %s262_s20 = scalar_lea.sflag [#allocation4], %s759_s3  ;;  %s850_s19 = int_to_ptr.vmem [resolvable:$true] %s291_s19 }
  0x41   : > { %v209_v15 = vadd.f32 %v208_v7, %v207_v10  ;;  %v239_v20 = vsel %vm204_vm1, %v231_v11, 0.0  ;;  %v241_v24 = vsel %vm204_vm1, %v232_v13, 0.0  ;;  %v214_v25 = vsel %vm204_vm1, %v200_v14, 0.0  ;;  %s510_s25 = scalar_lea.vmem %s813_s5, 16  ;;  %p909_p9 = scmp.ne.s32.totalorder %s905_s22, 0 }
  0x42   : > { %v240_v23 = vadd.f32 %v239_v20, %v238_v19  ;;  %v235_v26 = vmul.f32 %v200_v14, %v200_v14  ;;  %v243_v27 = vsel %vm204_vm1, %v233_v16, 0.0  ;;  %v216_v31 = vsel %vm204_vm1, %v201_v21, 0.0  ;;  %p511_p8 = scmp.ne.s32.totalorder %s813_s5, %s510_s25  ;;  %s630_s26 = smov [#allocation5]  }
  0x43   : > { %v211_v22 = vadd.f32 %v210_v12, %v209_v15  ;;  %v236_v32 = vmul.f32 %v201_v21, %v201_v21  ;;  %v245_v33 = vsel %vm204_vm1, %v234_v18, 0.0  ;;  %v218_v36 = vsel %vm204_vm1, %v202_v28, 0.0  ;;  %s514_s27 = sshll.u32 %s630_s26, 4  ;;  %s515_s27 = int_to_ptr.vmem [resolvable:$false] %s514_s27 }
  0x44   : > { %v242_v30 = vadd.f32 %v241_v24, %v240_v23  ;;  %v237_v37 = vmul.f32 %v202_v28, %v202_v28  ;;  %v247_v38 = vsel %vm204_vm1, %v235_v26, 0.0  ;;  %v203_v55 = vld [vmem:[%s770_s30] sm:$0x1]  ;;  %p512_p11 = pnand %p511_p8, %p909_p9  ;;  %s516_s28 = scalar_lea.vmem %s515_s27, 32 }
  0x45   : > { %v213_v29 = vadd.f32 %v212_v17, %v211_v22  ;;  %v249_v41 = vsel %vm204_vm1, %v236_v32, 0.0  ;;  %v229_v60 = vld [vmem:[%s775_s4] sm:$0x1]  ;;  %p517_p6 = scmp.lt.s32.totalorder %s813_s5, %s515_s27  ;;  %p518_p13 = scmp.lt.s32.totalorder %s516_s28, %s510_s25 }
  0x46   : > { %v244_v35 = vadd.f32 %v243_v27, %v242_v30  ;;  %v251_v44 = vsel %vm204_vm1, %v237_v37, 0.0  ;;  %p513_p0 = pneg %p512_p11 }
  0x47   : > { %v215_v34 = vadd.f32 %v214_v25, %v213_v29  ;;  %p519_p2 = por %p518_p13, %p517_p6 }
  0x48   : > { %v246_v40 = vadd.f32 %v245_v33, %v244_v35 }
  0x49   : > { %v217_v39 = vadd.f32 %v216_v31, %v215_v34  ;;  %p520_p5 = pnand %p519_p2, %p513_p0 }
  0x4a   : > { %v248_v43 = vadd.f32 %v247_v38, %v246_v40 }
  0x4b   : > { %v219_v42 = vadd.f32 %v218_v36, %v217_v39 }
  0x4c   : > { %v250_v46 = vadd.f32 %v249_v41, %v248_v43 }
  0x4d   : > { %v220_v45 = vrot.slane %v219_v42, 4 }
  0x4e   : > { %v252_v48 = vadd.f32 %v251_v44, %v250_v46 }
  0x4f   : > { %v221_v47 = vadd.f32 %v220_v45, %v219_v42 }
  0x50   : > { %v253_v50 = vrot.slane %v252_v48, 4 }
  0x51   : > { %v222_v49 = vrot.slane %v221_v47, 2 }
  0x52   : > { %v254_v52 = vadd.f32 %v253_v50, %v252_v48 }
  0x53   : > { %v223_v51 = vadd.f32 %v222_v49, %v221_v47 }
  0x54   : > { %v255_v54 = vrot.slane %v254_v52, 2 }
  0x55   : > { %v224_v53 = vrot.slane %v223_v51, 1 }
  0x56   : > { %v256_v57 = vadd.f32 %v255_v54, %v254_v52 }
  0x57   : > { %v225_v56 = vadd.f32 %v224_v53, %v223_v51 }
  0x58   : > { %v257_v59 = vrot.slane %v256_v57, 1 }
  0x59   : > { %v226_v58 = vadd.f32 %v225_v56, %v203_v55 }
  0x5a   : > { %v258_v61 = vadd.f32 %v257_v59, %v256_v57 }
  0x5b   : > { %228 = vst.msk [vmem:[%s770_s30] sm:$0x1] %vm192_vm0, %v226_v58 }
  0x5c   : > { %523 = shalt.err (!%p520_p5)
}
  0x5d   : > { %s524_s29 = scalar_lea.hbm %s811_s18, 16  ;;  %s528_s15 = scalar_lea.hbm %s900_s1, 32 }
  0x5e   : > { %p525_p4 = scmp.ne.s32.totalorder %s811_s18, %s524_s29  ;;  %p529_p12 = scmp.lt.u32.totalorder %s811_s18, %s900_s1 }
  0x5f   : > { %p530_p1 = scmp.lt.u32.totalorder %s528_s15, %s524_s29  ;;  %p532_p8 = scmp.lt.u32.totalorder %s524_s29, %s811_s18 }
  0x60   : > { %p526_p7 = pnand %p525_p4, %p909_p9 }
  0x61   : > { %p531_p3 = por %p530_p1, %p529_p12 }
  0x62   : > { %p527_p10 = pneg %p526_p7 }
  0x63   : > { %p533_p11 = por %p532_p8, %p531_p3 }
  0x65   : > { %p534_p0 = pnand %p533_p11, %p527_p10 }
  0x67   : > { %537 = shalt.err (!%p534_p0)
}
  0x68   : > { %412 = dma.vmem_to_hbm [thread:$0]  (%p909_p9), %s813_s5, 16, %s811_s18, %s262_s20   ;;  %v259_v62 = vadd.f32 %v258_v61, %v229_v60 }
  0x69   : > { %s846_s26 = scalar_lea.hbm %s901_s2, %s405_s21  ;;  %s266_s27 = scalar_lea.sflag [#allocation7], %s759_s3 }
  0x6a   : > { %260 = vst.msk [vmem:[%s775_s4] sm:$0x1] %vm192_vm0, %v259_v62  ;;  %s538_s28 = scalar_lea.vmem %s850_s19, 16  ;;  %s631_s12 = smov [#allocation6]  }
  0x6b   : > { %p539_p6 = scmp.ne.s32.totalorder %s850_s19, %s538_s28  ;;  %s542_s5 = sshll.u32 %s631_s12, 4  ;;  %s543_s5 = int_to_ptr.vmem [resolvable:$false] %s542_s5 }
  0x6c   : > { %s544_s18 = scalar_lea.vmem %s543_s5, 32  ;;  %p545_p5 = scmp.lt.s32.totalorder %s850_s19, %s543_s5 }
  0x6d   : > { %p540_p13 = pnand %p539_p6, %p909_p9  ;;  %p546_p4 = scmp.lt.s32.totalorder %s544_s18, %s538_s28 }
  0x6f   : > { %p541_p2 = pneg %p540_p13  ;;  %p547_p7 = por %p546_p4, %p545_p5 }
  0x71   : > { %p548_p10 = pnand %p547_p7, %p541_p2 }
  0x73   : > { %551 = shalt.err (!%p548_p10)
}
  0x74   : > { %s552_s3 = scalar_lea.hbm %s846_s26, 16  ;;  %s556_s20 = scalar_lea.hbm %s901_s2, 32 }
  0x75   : > { %p553_p12 = scmp.ne.s32.totalorder %s846_s26, %s552_s3  ;;  %p557_p8 = scmp.lt.u32.totalorder %s846_s26, %s901_s2 }
  0x76   : > { %p558_p11 = scmp.lt.u32.totalorder %s556_s20, %s552_s3  ;;  %p560_p6 = scmp.lt.u32.totalorder %s552_s3, %s846_s26 }
  0x77   : > { %p554_p1 = pnand %p553_p12, %p909_p9 }
  0x78   : > { %p559_p0 = por %p558_p11, %p557_p8 }
  0x79   : > { %p555_p3 = pneg %p554_p1 }
  0x7a   : > { %p561_p13 = por %p560_p6, %p559_p0 }
  0x7c   : > { %p562_p2 = pnand %p561_p13, %p555_p3 }
  0x7e   : > { %565 = shalt.err (!%p562_p2)
}
  0x7f   : > { %413 = dma.vmem_to_hbm [thread:$0]  (%p909_p9), %s850_s19, 16, %s846_s26, %s266_s27  }
  0x80 PF: > { %s303_s8 = sand.u32 1, %s604_s9   ;;  %p910_p5 = scmp.ne.s32.totalorder %s906_s24, 0 }
  0x81   : > { %p911_p4 = scmp.ge.s32.totalorder %s624_s14, 2  ;;  %s304_s15 = scalar_lea.sflag [#allocation4], %s303_s8 }
  0x83   : > { %p421_p7 = pnand %p911_p4, %p910_p5 }
  0x85   : > { %595 = dma.done.wait (!%p421_p7), %s304_s15, 16  }
  0x86   : > { %597 = vsyncadd (!%p421_p7), %s304_s15, 4294967280  ;;  %s312_s30 = scalar_lea.sflag [#allocation7], %s303_s8 }
  0x87   : > { %599 = dma.done.wait (!%p421_p7), %s312_s30, 16  }
  0x88   : > { %601 = vsyncadd (!%p421_p7), %s312_s30, 4294967280  ;;  %s22_s14 = sadd.s32 1, %s624_s14   ;;  %s912_s9 = smov %s608_s10 }
  0x89   : > { %p19_p10 = scmp.ge.s32.totalorder %s22_s14, 4   ;;  %s913_s10 = smov %s612_s11 }
  0x8a   : > { %s914_s11 = smov %s703_s23  ;;  %s915_s12 = smov %s620_s13 }
  0x8b   : > { %s916_s13 = smov %s918_s17  ;;  %21 = sbr.rel (!%p19_p10) target bundleno = 8 (0x8), region = 90 }
  0x92   :  { %316 = vsyncpa [#allocation3], 1 }
  0x93   :  { %318 = vsyncpa [#allocation3 + $0x1], 1 }
  0x94   :  { %319 = vsyncpa [#allocation4], 1 }
  0x95   :  { %321 = vsyncpa [#allocation4 + $0x1], 1 }
  0x96   :  { %322 = vsyncpa [#allocation7], 1 }
  0x97   :  { %324 = vsyncpa [#allocation7 + $0x1], 1 }

</bundles_post_ra>
